<compile_context>
chip_gen: v7x
topology: tpu7x:2x2x1
jax: 0.10.0
libtpu: 0.0.40
codegen_flags: <defaults>
</compile_context>

<pallas_src>
import jax
import jax.numpy as jnp
from jax.experimental import pallas as pl
from jax.experimental.pallas import tpu as pltpu


def _round_up(x: int, m: int) -> int:
    return (x + m - 1) // m * m


def _pick_seq_tile(n: int, cap: int) -> int:
    """Largest power-of-two tile (<= cap) that divides n, else the full n."""
    for t in (1024, 512, 256, 128, 64, 32, 16, 8):
        if t <= cap and t <= n and n % t == 0:
            return t
    return n


def _make_kernel(if_cls: bool, if_dis: bool, tn: int, n_patches: int,
                 n_tiles: int):
    cls_off = int(if_cls)
    n_extra = cls_off + int(if_dis)

    def kernel(*refs):
        if n_extra:
            patch_ref, w_ref, pos_ref, ht_ref, o_ref = refs
        else:
            patch_ref, w_ref, pos_ref, o_ref = refs
            ht_ref = None

        j = pl.program_id(1)

        # (tn, Kp) @ (Kp, E) on the MXU: bf16 inputs, f32 accumulation.
        proj = jnp.dot(patch_ref[0], w_ref[...],
                       preferred_element_type=jnp.float32)
        # conv bias is already folded into pos_ref in the wrapper.
        rows = (proj + pos_ref[...]).astype(o_ref.dtype)

        # cls / dis rows (batch independent, precomputed in the wrapper):
        # written once per batch element, on the first sequence tile.
        if n_extra:
            @pl.when(j == 0)
            def _():
                if if_cls:
                    o_ref[0, 0:1, :] = ht_ref[0:1, :].astype(o_ref.dtype)
                if if_dis:
                    r = cls_off + n_patches
                    o_ref[0, r:r + 1, :] = (
                        ht_ref[n_extra - 1:n_extra, :].astype(o_ref.dtype))

        # Direct sliced store of the projection rows — no (S, E) concat temp.
        if n_tiles == 1:
            o_ref[0, cls_off:cls_off + n_patches, :] = rows
        else:
            base = pl.multiple_of(j * tn, tn)
            o_ref[0, pl.ds(base + cls_off, tn), :] = rows

    return kernel


def patch_embedding(
    x,                      # (B, C, H, W)  -- NCHW, like PyTorch
    conv_w,                 # (E, C, P, P)  -- PyTorch Conv2d weight layout
    conv_b,                 # (E,)
    cls_token,              # (1, 1, E)
    dis_token,              # (1, 1, E)
    positions,              # (N + if_cls + if_dis, E)
    *,
    patch_size: int,
    if_cls: bool = True,
    if_dis: bool = False,
    out_dtype=jnp.float32,
    seq_tile: int = 512,    # cap on the N-tile (keeps v7x's 64 MiB VMEM happy)
):
    B, C, H, W = x.shape
    P = patch_size
    E = conv_w.shape[0]
    Hp, Wp = H // P, W // P
    N = Hp * Wp
    K = C * P * P
    cls_off = int(if_cls)
    n_extra = cls_off + int(if_dis)
    S = N + n_extra
    assert positions.shape == (S, E)

    # --- glue (bf16): unfold non-overlapping patches, matches Conv2d(k=s=P) --
    xb = x.astype(jnp.bfloat16)
    patches = xb.reshape(B, C, Hp, P, Wp, P)
    patches = patches.transpose(0, 2, 4, 1, 3, 5).reshape(B, N, K)

    # Conv weight (E, C, P, P) -> (K, E) so that  patches @ w == conv output.
    w = conv_w.reshape(E, K).T.astype(jnp.bfloat16)

    # Pad K (contraction dim) to a sublane multiple; zeros contribute nothing.
    Kp = max(_round_up(K, 8), 8)
    if Kp != K:
        patches = jnp.pad(patches, ((0, 0), (0, 0), (0, Kp - K)))
        w = jnp.pad(w, ((0, Kp - K), (0, 0)))

    # Fold the conv bias into the patch-row positions; fold cls/dis tokens into
    # their own position rows (all f32, tiny, computed once).
    posf = positions.astype(jnp.float32)
    pos_patch = posf[cls_off:cls_off + N] + conv_b.astype(jnp.float32)[None, :]
    ht_rows = []
    if if_cls:
        ht_rows.append(posf[0:1] + cls_token.reshape(1, E).astype(jnp.float32))
    if if_dis:
        ht_rows.append(posf[S - 1:S] + dis_token.reshape(1, E).astype(jnp.float32))
    ht = jnp.concatenate(ht_rows, axis=0) if ht_rows else None

    tn = _pick_seq_tile(N, seq_tile)
    NT = N // tn   # _pick_seq_tile always returns a divisor of N (or N itself)

    kernel = _make_kernel(if_cls, if_dis, tn, N, NT)

    in_specs = [
        pl.BlockSpec((1, tn, Kp), lambda i, j: (i, j, 0)),    # patches (bf16)
        pl.BlockSpec((Kp, E), lambda i, j: (0, 0)),           # weight  (bf16)
        pl.BlockSpec((tn, E), lambda i, j: (j, 0)),           # pos+bias (f32)
    ]
    args = [patches, w, pos_patch]
    if ht is not None:
        in_specs.append(pl.BlockSpec((n_extra, E), lambda i, j: (0, 0)))
        args.append(ht)

    # Advisory cost for XLA's scheduler.
    bytes_accessed = (patches.size * 2 + w.size * 2
                      + pos_patch.size * 4 * B + B * S * E * 4)
    cost = pl.CostEstimate(flops=2 * B * N * Kp * E,
                           transcendentals=0,
                           bytes_accessed=bytes_accessed)

    # TODO(synk): if E is not a multiple of 128 (e.g. 192), the output store is
    # lane-masked; padding E would change the module's output shape (and add an
    # extra HBM pass to slice it back), so we keep exact PyTorch semantics.
    return pl.pallas_call(
        kernel,
        out_shape=jax.ShapeDtypeStruct((B, S, E), out_dtype),
        grid_spec=pltpu.PrefetchScalarGridSpec(
            num_scalar_prefetch=0,
            grid=(B, NT),
            in_specs=in_specs,
            # Output block is resident across the sequence-tile axis; all rows
            # (head/tail + every patch tile) are written before writeback.
            out_specs=pl.BlockSpec((1, S, E), lambda i, j: (i, 0, 0)),
        ),
        compiler_params=pltpu.CompilerParams(
            dimension_semantics=("parallel", "arbitrary"),
        ),
        cost_estimate=cost,
    )(*args)


def _reference(x, conv_w, conv_b, cls_token, dis_token, positions,
               patch_size, if_cls=True, if_dis=False):
    """Pure-JAX f32 reference matching the PyTorch forward."""
    B, C, H, W = x.shape
    P = patch_size
    E = conv_w.shape[0]
    out = jax.lax.conv_general_dilated(
        x.astype(jnp.float32), conv_w.astype(jnp.float32),
        window_strides=(P, P), padding="VALID",
        dimension_numbers=("NCHW", "OIHW", "NCHW"),
    ) + conv_b.reshape(1, E, 1, 1)
    out = out.reshape(B, E, -1).transpose(0, 2, 1)        # b e h w -> b (hw) e
    parts = []
    if if_cls:
        parts.append(jnp.broadcast_to(cls_token, (B, 1, E)))
    parts.append(out)
    if if_dis:
        parts.append(jnp.broadcast_to(dis_token, (B, 1, E)))
    out = jnp.concatenate(parts, axis=1)
    return out + positions[None]


if __name__ == "__main__":
    # Small shapes: in_channels=4, patch_size=2, emb_size=32, img_size=16
    B, C, P, E, IMG = 2, 4, 2, 32, 16
    N = (IMG // P) ** 2

    key = jax.random.PRNGKey(0)
    kx, kw, kb, kc, kd, kp1, kp2 = jax.random.split(key, 7)
    x = jax.random.normal(kx, (B, C, IMG, IMG), jnp.float32)
    conv_w = jax.random.normal(kw, (E, C, P, P), jnp.float32) * 0.05
    conv_b = jax.random.normal(kb, (E,), jnp.float32) * 0.05
    cls_token = jax.random.normal(kc, (1, 1, E), jnp.float32)
    dis_token = jax.random.normal(kd, (1, 1, E), jnp.float32)

    # Config 1: cls token only (module default).
    if_cls, if_dis = True, False
    S1 = N + int(if_cls) + int(if_dis)
    positions1 = jax.random.normal(kp1, (S1, E), jnp.float32)
    out1 = patch_embedding(x, conv_w, conv_b, cls_token, dis_token, positions1,
                           patch_size=P, if_cls=if_cls, if_dis=if_dis)
    out1 = jax.block_until_ready(out1)
    ref1 = _reference(x, conv_w, conv_b, cls_token, dis_token, positions1,
                      P, if_cls, if_dis)
    assert out1.shape == (B, S1, E), out1.shape
    assert jnp.allclose(out1, ref1, atol=2e-2, rtol=2e-2), "mismatch (cls only)"

    # Config 2: cls + distillation token (exercises the tail-row path).
    if_cls, if_dis = True, True
    S2 = N + int(if_cls) + int(if_dis)
    positions2 = jax.random.normal(kp2, (S2, E), jnp.float32)
    out2 = patch_embedding(x, conv_w, conv_b, cls_token, dis_token, positions2,
                           patch_size=P, if_cls=if_cls, if_dis=if_dis)
    out2 = jax.block_until_ready(out2)
    ref2 = _reference(x, conv_w, conv_b, cls_token, dis_token, positions2,
                      P, if_cls, if_dis)
    assert out2.shape == (B, S2, E), out2.shape
    assert jnp.allclose(out2, ref2, atol=2e-2, rtol=2e-2), "mismatch (cls+dis)"

    print("KERNEL_OK")
</pallas_src>

<mosaic_0001>
module attributes {stable_mosaic.version = 11 : i64} {
  func.func @kernel(%arg0: i32, %arg1: i32, %arg2: memref<1x64x16xbf16, #tpu.memory_space<vmem>>, %arg3: memref<16x32xbf16, #tpu.memory_space<vmem>>, %arg4: memref<64x32xf32, #tpu.memory_space<vmem>>, %arg5: memref<1x32xf32, #tpu.memory_space<vmem>>, %arg6: memref<1x65x32xf32, #tpu.memory_space<vmem>>) attributes {dimension_semantics = [#tpu.dimension_semantics<parallel>, #tpu.dimension_semantics<arbitrary>], iteration_bounds = array<i64: 2, 1>, scalar_prefetch = 0 : i64, scratch_operands = 0 : i64, tpu.core_type = #tpu.core_type<tc>, window_params = [{transform_indices = @transform_0, window_bounds = array<i64: 1, 64, 16>}, {pipeline_mode = #tpu.pipeline_mode<synchronous>, transform_indices = @transform_1, window_bounds = array<i64: 16, 32>}, {transform_indices = @transform_2, window_bounds = array<i64: 64, 32>}, {pipeline_mode = #tpu.pipeline_mode<synchronous>, transform_indices = @transform_3, window_bounds = array<i64: 1, 32>}, {transform_indices = @transform_4, window_bounds = array<i64: 1, 65, 32>}]} {
    %c0 = arith.constant 0 : index
    %c0_0 = arith.constant 0 : index
    %c0_1 = arith.constant 0 : index
    %0 = vector.load %arg2[%c0, %c0_0, %c0_1] : memref<1x64x16xbf16, #tpu.memory_space<vmem>>, vector<1x64x16xbf16>
    %1 = vector.shape_cast %0 : vector<1x64x16xbf16> to vector<64x16xbf16>
    %c0_2 = arith.constant 0 : index
    %c0_3 = arith.constant 0 : index
    %2 = vector.load %arg3[%c0_2, %c0_3] : memref<16x32xbf16, #tpu.memory_space<vmem>>, vector<16x32xbf16>
    %cst = arith.constant dense<0.000000e+00> : vector<64x32xf32>
    %3 = tpu.matmul %1, %2, %cst {dimension_numbers = #tpu.dot_dimension_numbers<[1], [0], [0], [1], [0, 0, 1, 1], [], []>} : vector<64x16xbf16>, vector<16x32xbf16>, vector<64x32xf32> -> vector<64x32xf32>
    %c0_4 = arith.constant 0 : index
    %c0_5 = arith.constant 0 : index
    %4 = vector.load %arg4[%c0_4, %c0_5] : memref<64x32xf32, #tpu.memory_space<vmem>>, vector<64x32xf32>
    %5 = arith.addf %3, %4 : vector<64x32xf32>
    %c0_i32 = arith.constant 0 : i32
    %6 = arith.cmpi eq, %arg1, %c0_i32 : i32
    %7 = arith.extui %6 : i1 to i32
    %c0_i32_6 = arith.constant 0 : i32
    %8 = arith.cmpi ne, %7, %c0_i32_6 : i32
    scf.if %8 {
      %c0_9 = arith.constant 0 : index
      %c0_10 = arith.constant 0 : index
      %12 = vector.load %arg5[%c0_9, %c0_10] : memref<1x32xf32, #tpu.memory_space<vmem>>, vector<1x32xf32>
      %c0_11 = arith.constant 0 : index
      %c0_12 = arith.constant 0 : index
      %c0_13 = arith.constant 0 : index
      %13 = vector.load %arg6[%c0_11, %c0_12, %c0_13] : memref<1x65x32xf32, #tpu.memory_space<vmem>>, vector<1x1x32xf32>
      %14 = vector.shape_cast %13 : vector<1x1x32xf32> to vector<1x32xf32>
      %15 = vector.shape_cast %12 : vector<1x32xf32> to vector<1x1x32xf32>
      tpu.vector_store %arg6[%c0_11, %c0_12, %c0_13], %15 {strides = array<i32>} : memref<1x65x32xf32, #tpu.memory_space<vmem>>, vector<1x1x32xf32>,
    } else {
    }
    %c0_7 = arith.constant 0 : index
    %c1 = arith.constant 1 : index
    %c0_8 = arith.constant 0 : index
    %9 = vector.load %arg6[%c0_7, %c1, %c0_8] : memref<1x65x32xf32, #tpu.memory_space<vmem>>, vector<1x64x32xf32>
    %10 = vector.shape_cast %9 : vector<1x64x32xf32> to vector<64x32xf32>
    %11 = vector.shape_cast %5 : vector<64x32xf32> to vector<1x64x32xf32>
    tpu.vector_store %arg6[%c0_7, %c1, %c0_8], %11 {strides = array<i32>} : memref<1x65x32xf32, #tpu.memory_space<vmem>>, vector<1x64x32xf32>,
    return
  }
  func.func @transform_0(%arg0: i32, %arg1: i32) -> (i32, i32, i32) {
    %c0_i32 = arith.constant 0 : i32
    %c0_i32_0 = arith.constant 0 : i32
    return %arg0, %arg1, %c0_i32 : i32, i32, i32
  }
  func.func @transform_1(%arg0: i32, %arg1: i32) -> (i32, i32) {
    %c0_i32 = arith.constant 0 : i32
    %c0_i32_0 = arith.constant 0 : i32
    %c0_i32_1 = arith.constant 0 : i32
    return %c0_i32, %c0_i32_0 : i32, i32
  }
  func.func @transform_2(%arg0: i32, %arg1: i32) -> (i32, i32) {
    %c0_i32 = arith.constant 0 : i32
    %c0_i32_0 = arith.constant 0 : i32
    return %arg1, %c0_i32 : i32, i32
  }
  func.func @transform_3(%arg0: i32, %arg1: i32) -> (i32, i32) {
    %c0_i32 = arith.constant 0 : i32
    %c0_i32_0 = arith.constant 0 : i32
    %c0_i32_1 = arith.constant 0 : i32
    return %c0_i32, %c0_i32_0 : i32, i32
  }
  func.func @transform_4(%arg0: i32, %arg1: i32) -> (i32, i32, i32) {
    %c0_i32 = arith.constant 0 : i32
    %c0_i32_0 = arith.constant 0 : i32
    %c0_i32_1 = arith.constant 0 : i32
    return %arg0, %c0_i32, %c0_i32_0 : i32, i32, i32
  }
}

</mosaic_0001>

<bundles_post_ra>
// kernel: tpu_custom_call.1
= control target key start
LH: loop header
LB: loop body
LE: loop exit
PB: predicated region body
PF: predicated region fallthrough
CT: control target
= control target key end

     0   :  { %s589_s15 = smov 0   ;;  %s591_s16 = smov 0   ;;  %s671_s0 = inlined_call_operand.vmem [shape: bf16[2,64,16], index: 0, kind: input, shape index: {}]   ;;  %s672_s1 = inlined_call_operand.vmem [shape: bf16[16,32], index: 1, kind: input, shape index: {}]   ;;  %s673_s2 = inlined_call_operand.vmem [shape: f32[64,32], index: 2, kind: input, shape index: {}]   ;;  %s674_s3 = inlined_call_operand.vmem [shape: f32[1,32], index: 3, kind: input, shape index: {}]   ;;  %s675_s4 = inlined_call_operand.vmem [shape: f32[2,65,32], index: 4, kind: output, shape index: {}]  }
   0x1   :  { %s593_s17 = smov 0  }
   0x2 LB: > { %s26_s18 = sadd.s32 1, %s558_s16  ;;  %p477_p0 = scmp.ge.s32.totalorder %s562_s17, 1  ;;  %s562_s17 = sphi %s593_s17, %s14_s17   ;;  %s558_s16 = sphi %s591_s16, %s677_s16   ;;  %s554_s15 = sphi %s589_s15, %s676_s15  }
   0x3   : > { %p28_p1 = scmp.ge.s32.totalorder %s26_s18, 2  ;;  %p192_p2 = scmp.lt.s32.totalorder %s562_s17, 3 }
   0x5   : > { %s679_s18 = smov (%p28_p1, %s26_s18), 0  ;;  %p193_p3 = pnand %p477_p0, %p192_p2 }
   0x6   : > { %v535_v0 = vld [vmem:[%s672_s1] sm:$0xff] (!%p193_p3)   ;;  %p228_p4 = scmp.lt.s32.totalorder (!%p193_p3), %s554_s15, 1  ;;  %vm376_vm0 = vcmask (!%p193_p3), 253952   ;;  %vm293_vm1 = vcmask (!%p193_p3), 130048   ;;  %v261_v6 = vld [vmem:[%s673_s2 + $0x10] sm:$0xff] (!%p193_p3)  ;;  %vm378_vm2 = vcmask (!%p193_p3), 261120  }
   0x7   : > { %196 = sbr.rel (%p193_p3) target bundleno = 237 (0xed), region = 36  ;;  %498 = vmatprep.subr.bf16.mxu0 (!%p193_p3), %v535_v0  ;;  %508 = vmatprep.subr.bf16.mxu1 (!%p193_p3), %v535_v0  ;;  %v375_v1 = vld [vmem:[%s674_s3] sm:$0x1] (!%p193_p3)  ;;  %v265_v7 = vld [vmem:[%s673_s2 + $0x30] sm:$0xff] (!%p193_p3)  ;;  %v262_v11 = vld [vmem:[%s673_s2 + $0x18] sm:$0xff] (!%p193_p3) }
   0x8   : > { %499 = vmatpush3.bf16.msra.mxu0 (!%p193_p3), %v535_v0  ;;  %509 = vmatpush3.bf16.msra.mxu1 (!%p193_p3), %v535_v0  ;;  %v259_v8 = vld [vmem:[%s673_s2] sm:$0xff] (!%p193_p3)  ;;  %v266_v15 = vld [vmem:[%s673_s2 + $0x38] sm:$0xff] (!%p193_p3)  ;;  %v260_v16 = vld [vmem:[%s673_s2 + $0x8] sm:$0xff] (!%p193_p3) }
   0x9   : > { %v263_v10 = vld [vmem:[%s673_s2 + $0x20] sm:$0xff] (!%p193_p3)  ;;  %v264_v21 = vld [vmem:[%s673_s2 + $0x28] sm:$0xff] (!%p193_p3) }
   0xe   : > { %s681_s15 = smov (!%p228_p4, %s554_s15), 1 }
   0xf   : > { %s492_s21 = sshll.u32 %s681_s15, 5  ;;  %s510_s22 = smul.u32 72, %s681_s15 }
  0x10   : > { %s235_s27 = scalar_lea.vmem %s671_s0, %s492_s21 }
  0x11   : > { %s619_s30 = scalar_lea.vmem %s675_s4, %s510_s22  ;;  %v536_v2 = vld [vmem:[%s235_s27] sm:$0xff]   ;;  %v537_v3 = vld [vmem:[%s235_s27 + $0x10] sm:$0xff]   ;;  %v538_v4 = vld [vmem:[%s235_s27 + $0x8] sm:$0xff]  }
  0x12   : > { %377 = vst.msk [vmem:[%s619_s30] sm:$0x1] %vm376_vm0, %v375_v1  ;;  %500 = vmatprep.mubr.msk.bf16.mxu0 %vm293_vm1, %v536_v2  ;;  %504 = vmatprep.mubr.msk.bf16.mxu1 %vm293_vm1, %v537_v3  ;;  %v539_v5 = vld [vmem:[%s235_s27 + $0x18] sm:$0xff]  }
  0x13   : > { %501 = vmatmul.mubr.msk.bf16.vlgmr.msra.gmra.mrb[0].mxu0 %vm293_vm1, %v538_v4  ;;  %505 = vmatmul.mubr.msk.bf16.vlgmr.msra.gmra.mrb[0].mxu1 %vm293_vm1, %v539_v5 }
  0xe6   : > { %v502_v9 = vpop.f32.mrb[0].mxu0  ;;  %v506_v13 = vpop.f32.mrb[0].mxu1 }
  0xe7   : > { %v349_v12 = vadd.f32 %v502_v9, %v261_v6  ;;  %v340_v14 = vpop.f32.mrb[1].mxu0  ;;  %v365_v17 = vadd.f32 %v506_v13, %v265_v7  ;;  %v356_v19 = vpop.f32.mrb[1].mxu1 }
  0xe8   : > { %v341_v18 = vadd.f32 %v340_v14, %v259_v8  ;;  %v503_v20 = vpop.f32.mrb[2].mxu0  ;;  %v357_v22 = vadd.f32 %v356_v19, %v263_v10  ;;  %v507_v24 = vpop.f32.mrb[2].mxu1 }
  0xe9   : > { %381 = vst.msk [vmem:[%s619_s30 + $0x11] sm:$0xff] %vm378_vm2, %v349_v12  ;;  %v352_v23 = vadd.f32 %v503_v20, %v262_v11  ;;  %v343_v25 = vpop.f32.mrb[3].mxu0  ;;  %385 = vst.msk [vmem:[%s619_s30 + $0x31] sm:$0xff] %vm378_vm2, %v365_v17  ;;  %v368_v26 = vadd.f32 %v507_v24, %v266_v15  ;;  %v359_v28 = vpop.f32.mrb[3].mxu1 }
  0xea   : > { %379 = vst.msk [vmem:[%s619_s30 + $0x1] sm:$0xff] %vm378_vm2, %v341_v18  ;;  %v344_v27 = vadd.f32 %v343_v25, %v260_v16  ;;  %383 = vst.msk [vmem:[%s619_s30 + $0x21] sm:$0xff] %vm378_vm2, %v357_v22  ;;  %v360_v29 = vadd.f32 %v359_v28, %v264_v21 }
  0xeb   : > { %382 = vst.msk [vmem:[%s619_s30 + $0x19] sm:$0xff] %vm378_vm2, %v352_v23  ;;  %386 = vst.msk [vmem:[%s619_s30 + $0x39] sm:$0xff] %vm378_vm2, %v368_v26 }
  0xec   : > { %380 = vst.msk [vmem:[%s619_s30 + $0x9] sm:$0xff] %vm378_vm2, %v344_v27  ;;  %384 = vst.msk [vmem:[%s619_s30 + $0x29] sm:$0xff] %vm378_vm2, %v360_v29 }
  0xed PF: > { %s14_s17 = sadd.s32 1, %s562_s17   ;;  %s676_s15 = smov %s558_s16 }
  0xee   : > { %p11_p5 = scmp.ge.s32.totalorder %s14_s17, 4   ;;  %s677_s16 = smov %s679_s18 }
  0xf0   :  { %13 = sbr.rel (!%p11_p5) target bundleno = 2 (0x2), region = 73 }

</bundles_post_ra>
